<compile_context>
chip_gen: v5e
topology: v5e:2x2
jax: 0.10.0
libtpu: 0.0.40
codegen_flags: <defaults>
</compile_context>

<pallas_src>
import functools

import jax
import jax.numpy as jnp
from jax.experimental import pallas as pl
from jax.experimental.pallas import tpu as pltpu


def _attention_kernel(state_ref, target_ref, score_ref, out_ref, *, sub_rows):
    # state_ref : (nb, D)     target_ref : (nb, T, D)
    # score_ref : (nb, T)     out_ref    : (nb, D)
    nb = state_ref.shape[0]
    n_sub = nb // sub_rows  # static

    def compute_rows(r):
        # Per-sub-block f32 working set: O(sub_rows * T * D), independent of nb.
        st = state_ref[pl.ds(r, sub_rows), :].astype(jnp.float32)        # (s, D)
        tg = target_ref[pl.ds(r, sub_rows), :, :].astype(jnp.float32)    # (s, T, D)

        # scores[b, t] = sum_d state[b, d] * target[b, t, d]   (VPU + XLU reduce)
        scores = jnp.sum(st[:, None, :] * tg, axis=-1)                   # (s, T)

        # Numerically stable softmax over T, exact division (f32).
        m = jnp.max(scores, axis=-1, keepdims=True)                      # (s, 1)
        e = jnp.exp(scores - m)                                          # (s, T)
        probs = e / jnp.sum(e, axis=-1, keepdims=True)                   # (s, T)

        # out[b, d] = sum_t probs[b, t] * target[b, t, d]
        out = jnp.sum(probs[:, :, None] * tg, axis=1)                    # (s, D)

        score_ref[pl.ds(r, sub_rows), :] = probs.astype(score_ref.dtype)
        out_ref[pl.ds(r, sub_rows), :] = out.astype(out_ref.dtype)

    if n_sub == 1:
        compute_rows(0)
    else:
        def body(i, carry):
            compute_rows(pl.multiple_of(i * sub_rows, sub_rows))
            return carry

        jax.lax.fori_loop(0, n_sub, body, 0)


def attention(decoder_state: jax.Array, target: jax.Array,
              *, vmem_limit_bytes: int | None = None):
    """decoder_state: (N, 1, D), target: (N, T, D) -> (score (N,1,T), output (N,1,D))."""
    N, one, D = decoder_state.shape
    assert one == 1
    N2, T, D2 = target.shape
    assert N2 == N and D2 == D

    out_dtype = jnp.result_type(decoder_state.dtype, target.dtype)
    state_2d = decoder_state.reshape(N, D)

    # ---- VMEM-budget-driven batch-block sizing -----------------------------
    if vmem_limit_bytes is None:
        try:
            cap = int(getattr(pltpu.get_tpu_info(), "vmem_capacity_bytes",
                              64 * 1024 * 1024))
        except Exception:
            cap = 64 * 1024 * 1024  # v7x per-TC floor
        vmem_limit_bytes = min(cap * 3 // 4, 96 * 1024 * 1024)

    # Target tile per pipeline buffer: ~1/4 of the scoped limit (x2 buffers
    # = half the limit; the rest is headroom for outputs, state and the
    # bounded f32 sub-block temporaries).
    tile_budget_bytes = max(1, vmem_limit_bytes // 4)
    row_bytes = T * D * target.dtype.itemsize

    if N < 8:
        nb = N  # block == full batch dim (satisfies the (8,128) rule)
    else:
        nb = min(max(1, tile_budget_bytes // row_bytes), N)
        nb = max(8, (nb // 8) * 8)
        # Keep >= 2 grid steps when there's enough batch (v7x: 2 TensorCores).
        if nb >= N and N >= 16:
            nb = max(8, (((N + 1) // 2) // 8) * 8)

    sub_rows = min(8, nb)          # nb is a multiple of sub_rows by construction
    grid = (pl.cdiv(N, nb),)       # ragged last block handled by Pallas masking

    kernel = functools.partial(_attention_kernel, sub_rows=sub_rows)

    grid_spec = pltpu.PrefetchScalarGridSpec(
        num_scalar_prefetch=0,
        grid=grid,
        in_specs=[
            pl.BlockSpec((nb, D), lambda b: (b, 0)),
            pl.BlockSpec((nb, T, D), lambda b: (b, 0, 0)),
        ],
        out_specs=[
            pl.BlockSpec((nb, T), lambda b: (b, 0)),
            pl.BlockSpec((nb, D), lambda b: (b, 0)),
        ],
    )

    score_2d, out_2d = pl.pallas_call(
        kernel,
        out_shape=(
            jax.ShapeDtypeStruct((N, T), out_dtype),
            jax.ShapeDtypeStruct((N, D), out_dtype),
        ),
        grid_spec=grid_spec,
        compiler_params=pltpu.CompilerParams(
            dimension_semantics=("parallel",),
            vmem_limit_bytes=int(vmem_limit_bytes),
        ),
    )(state_2d, target)

    score = score_2d.reshape(N, 1, T)
    output = out_2d.reshape(N, 1, D)
    return score, output


def _reference(decoder_state, target):
    scores = jnp.einsum("nod,ntd->not", decoder_state, target)
    probs = jax.nn.softmax(scores, axis=-1)
    out = jnp.einsum("not,ntd->nod", probs, target)
    return probs, out


if __name__ == "__main__":
    # Small shapes consistent with the module: batch=2, T_i=8, D=32
    N, T, D = 2, 8, 32
    key = jax.random.PRNGKey(0)
    k1, k2 = jax.random.split(key)
    decoder_state = jax.random.normal(k1, (N, 1, D), dtype=jnp.float32)
    target = jax.random.normal(k2, (N, T, D), dtype=jnp.float32)

    score, output = attention(decoder_state, target)
    jax.block_until_ready((score, output))

    ref_score, ref_out = _reference(decoder_state, target)
    assert score.shape == (N, 1, T) and output.shape == (N, 1, D)
    assert jnp.allclose(score, ref_score, atol=1e-5, rtol=1e-5), "score mismatch"
    assert jnp.allclose(output, ref_out, atol=1e-5, rtol=1e-5), "output mismatch"

    print("KERNEL_OK")
</pallas_src>

<mosaic_0001>
module attributes {stable_mosaic.version = 11 : i64} {
  func.func @_attention_kernel(%arg0: i32, %arg1: memref<2x32xf32, #tpu.memory_space<vmem>>, %arg2: memref<2x8x32xf32, #tpu.memory_space<vmem>>, %arg3: memref<2x8xf32, #tpu.memory_space<vmem>>, %arg4: memref<2x32xf32, #tpu.memory_space<vmem>>) attributes {dimension_semantics = [#tpu.dimension_semantics<parallel>], iteration_bounds = array<i64: 1>, scalar_prefetch = 0 : i64, scratch_operands = 0 : i64, tpu.core_type = #tpu.core_type<tc>, window_params = [{transform_indices = @transform_0, window_bounds = array<i64: 2, 32>}, {transform_indices = @transform_1, window_bounds = array<i64: 2, 8, 32>}, {transform_indices = @transform_2, window_bounds = array<i64: 2, 8>}, {transform_indices = @transform_3, window_bounds = array<i64: 2, 32>}]} {
    %c0 = arith.constant 0 : index
    %c0_0 = arith.constant 0 : index
    %0 = vector.load %arg1[%c0, %c0_0] : memref<2x32xf32, #tpu.memory_space<vmem>>, vector<2x32xf32>
    %c0_1 = arith.constant 0 : index
    %c0_2 = arith.constant 0 : index
    %c0_3 = arith.constant 0 : index
    %1 = vector.load %arg2[%c0_1, %c0_2, %c0_3] : memref<2x8x32xf32, #tpu.memory_space<vmem>>, vector<2x8x32xf32>
    %2 = vector.shape_cast %0 : vector<2x32xf32> to vector<2x1x32xf32>
    %3 = vector.broadcast %2 : vector<2x1x32xf32> to vector<2x8x32xf32>
    %4 = arith.mulf %3, %1 : vector<2x8x32xf32>
    %cst = arith.constant dense<0.000000e+00> : vector<2x8xf32>
    %5 = vector.multi_reduction <add>, %4, %cst [2] : vector<2x8x32xf32> to vector<2x8xf32>
    %cst_4 = arith.constant dense<0xFF800000> : vector<2xf32>
    %6 = vector.multi_reduction <maximumf>, %5, %cst_4 [1] : vector<2x8xf32> to vector<2xf32>
    %7 = vector.shape_cast %6 : vector<2xf32> to vector<2x1xf32>
    %8 = vector.broadcast %7 : vector<2x1xf32> to vector<2x8xf32>
    %9 = arith.subf %5, %8 : vector<2x8xf32>
    %10 = math.exp %9 : vector<2x8xf32>
    %cst_5 = arith.constant dense<0.000000e+00> : vector<2xf32>
    %11 = vector.multi_reduction <add>, %10, %cst_5 [1] : vector<2x8xf32> to vector<2xf32>
    %12 = vector.shape_cast %11 : vector<2xf32> to vector<2x1xf32>
    %13 = vector.broadcast %12 : vector<2x1xf32> to vector<2x8xf32>
    %14 = arith.divf %10, %13 : vector<2x8xf32>
    %15 = vector.shape_cast %14 : vector<2x8xf32> to vector<2x8x1xf32>
    %16 = vector.broadcast %15 : vector<2x8x1xf32> to vector<2x8x32xf32>
    %17 = arith.mulf %16, %1 : vector<2x8x32xf32>
    %cst_6 = arith.constant dense<0.000000e+00> : vector<2x32xf32>
    %18 = vector.multi_reduction <add>, %17, %cst_6 [1] : vector<2x8x32xf32> to vector<2x32xf32>
    %c0_7 = arith.constant 0 : index
    %c0_8 = arith.constant 0 : index
    %19 = vector.load %arg3[%c0_7, %c0_8] : memref<2x8xf32, #tpu.memory_space<vmem>>, vector<2x8xf32>
    tpu.vector_store %arg3[%c0_7, %c0_8], %14 {strides = array<i32>} : memref<2x8xf32, #tpu.memory_space<vmem>>, vector<2x8xf32>,
    %c0_9 = arith.constant 0 : index
    %c0_10 = arith.constant 0 : index
    %20 = vector.load %arg4[%c0_9, %c0_10] : memref<2x32xf32, #tpu.memory_space<vmem>>, vector<2x32xf32>
    tpu.vector_store %arg4[%c0_9, %c0_10], %18 {strides = array<i32>} : memref<2x32xf32, #tpu.memory_space<vmem>>, vector<2x32xf32>,
    return
  }
  func.func @transform_0(%arg0: i32) -> (i32, i32) {
    %c0_i32 = arith.constant 0 : i32
    %c0_i32_0 = arith.constant 0 : i32
    return %arg0, %c0_i32 : i32, i32
  }
  func.func @transform_1(%arg0: i32) -> (i32, i32, i32) {
    %c0_i32 = arith.constant 0 : i32
    %c0_i32_0 = arith.constant 0 : i32
    %c0_i32_1 = arith.constant 0 : i32
    return %arg0, %c0_i32, %c0_i32_0 : i32, i32, i32
  }
  func.func @transform_2(%arg0: i32) -> (i32, i32) {
    %c0_i32 = arith.constant 0 : i32
    %c0_i32_0 = arith.constant 0 : i32
    return %arg0, %c0_i32 : i32, i32
  }
  func.func @transform_3(%arg0: i32) -> (i32, i32) {
    %c0_i32 = arith.constant 0 : i32
    %c0_i32_0 = arith.constant 0 : i32
    return %arg0, %c0_i32 : i32, i32
  }
}

</mosaic_0001>

<bundles_post_ra>
// kernel: tpu_custom_call.1
= control target key start
LH: loop header
LB: loop body
LE: loop exit
PB: predicated region body
PF: predicated region fallthrough
CT: control target
= control target key end

     0   :  { %9 = vsyncpa [#allocation3], 0  ;;  %s396_s0 = inlined_call_operand.hbm [shape: f32[2,32], index: 0, kind: input, shape index: {}]   ;;  %s397_s1 = inlined_call_operand.hbm [shape: f32[2,8,32], index: 1, kind: input, shape index: {}]   ;;  %s398_s2 = inlined_call_operand.hbm [shape: f32[2,8], index: 2, kind: output, shape index: {0}]   ;;  %s399_s3 = inlined_call_operand.hbm [shape: f32[2,32], index: 3, kind: output, shape index: {1}]  }
   0x1   :  { %10 = vsyncpa [#allocation6], 0 }
   0x2   :  { %11 = vsyncpa [#allocation4], 0 }
   0x3   :  { %12 = vsyncpa [#allocation9], 0  ;;  %s18_s14 = sshll.u32 %s396_s0, 4  ;;  %s330_s15 = smov [#allocation2]   ;;  %s19_s14 = int_to_ptr.hbm [resolvable:$true] %s18_s14 }
   0x4   :  { %s20_s16 = sshll.u32 %s330_s15, 4  ;;  %s28_s19 = sshll.u32 %s397_s1, 4  ;;  %s21_s16 = int_to_ptr.vmem [resolvable:$true] %s20_s16  ;;  %s29_s19 = int_to_ptr.hbm [resolvable:$true] %s28_s19 }
   0x5   :  { %23 = dma.hbm_to_vmem [thread:$0]  %s19_s14, 32, %s21_s16, [#allocation3]  }
   0x6   :  { %s331_s20 = smov [#allocation5]   ;;  %s332_s22 = smov 128  }
   0x7   :  { %s30_s21 = sshll.u32 %s331_s20, 4  ;;  %s333_s23 = smov 8   ;;  %s31_s21 = int_to_ptr.vmem [resolvable:$true] %s30_s21 }
   0x8   :  { %36 = dma.hbm_to_vmem [thread:$0]  %s29_s19, 256, %s31_s21, [#allocation6], %s332_s22, %s332_s22, %s333_s23  }
   0x9   :  { %322 = dma.done.wait [#allocation3], 32  }
   0xa   :  { %323 = vsyncadd [#allocation3], 4294967264 }
   0xb   :  { %324 = dma.done.wait [#allocation6], 256  }
   0xc   :  { %325 = vsyncadd [#allocation6], 4294967040  ;;  %v45_v0 = vld [vmem:[#allocation2] sm:$0x3]  ;;  %v363_v1 = vld [vmem:[#allocation5] sm:$0xff]  ;;  %vm56_vm0 = vcmask 261120   ;;  %v65_v11 = vlaneseq }
   0xd   :  { %v50_v2 = vperm.slane %v45_v0, 0  ;;  %v49_v3 = vrot.slane %v45_v0, 1  ;;  %v366_v6 = vld [vmem:[#allocation5 + $0x8] sm:$0xff]  ;;  %vm69_vm1 = vcmask 1041409   ;;  %vm72_vm2 = vcmask 58368   ;;  %s335_s0 = smov [#allocation7]  }
   0xe   :  { %v371_v12 = vand.u32 127, %v65_v11  ;;  %v334_v18 = vmov 0   ;;  %s179_s1 = sshll.u32 %s335_s0, 4  ;;  %s181_s26 = sshll.u32 %s398_s2, 4  ;;  %vm172_vm11 = vcmask 254976   ;;  %s180_s1 = int_to_ptr.vmem [resolvable:$true] %s179_s1  ;;  %s182_s26 = int_to_ptr.hbm [resolvable:$true] %s181_s26 }
   0xf   :  { %v54_v4 = vmul.f32 %v50_v2, %v363_v1  ;;  %v51_v5 = vperm.slane %v49_v3, 0  ;;  %216 = vset.pattern.permute.xlu2 %v334_v18  ;;  %215 = vset.pattern.permute.xlu1 %v334_v18  ;;  %s336_s2 = smov [#allocation8]   ;;  %s192_s30 = sshll.u32 %s399_s3, 4  ;;  %s193_s30 = int_to_ptr.hbm [resolvable:$true] %s192_s30 }
  0x10   :  { %217 = vset.pattern.permute.xlu0 %v334_v18  ;;  %s190_s27 = sshll.u32 %s336_s2, 4  ;;  %s191_s27 = int_to_ptr.vmem [resolvable:$true] %s190_s27 }
  0x11   :  { %v57_v7 = vsel %vm56_vm0, %v54_v4, 0.0  ;;  %v55_v8 = vmul.f32 %v51_v5, %v366_v6 }
  0x12   :  { %58 = vadd.xlane.f32.xlu0 %v57_v7 }
  0x13   :  { %v60_v9 = vsel %vm56_vm0, %v55_v8, 0.0 }
  0x1a   :  { %61 = vadd.xlane.f32.xlu0 %v60_v9 }
  0x85   :  { %v59_v10 = vpop.xlane.xlu0 %58 }
  0x86   :  { %v67_v14 = vperm.slane %v59_v10, %v371_v12 }
  0x8d   :  { %v62_v13 = vpop.xlane.xlu0 %61 }
  0x8e   :  { %v68_v15 = vperm.slane %v62_v13, %v371_v12 }
  0x90   :  { %v70_v16 = vsel %vm69_vm1, %v68_v15, %v67_v14 }
  0x91   :  { %v73_v17 = vsel %vm72_vm2, %v70_v16, -inf }
  0x92   :  { %74 = vmax.xlane.f32.xlu1 %v73_v17 }
 0x105   :  { %v75_v19 = vpop.xlane.xlu1 %74 }
 0x106   :  { %v77_v20 = vperm.slane %v75_v19, 0  ;;  %v78_v21 = vperm.slane %v75_v19, 1 }
 0x108   :  { %v81_v22 = vsub.f32 %v59_v10, %v77_v20  ;;  %v82_v23 = vsub.f32 %v62_v13, %v78_v21 }
 0x10a   :  { %v83_v24 = vmul.f32 1.442695, %v81_v22  ;;  %v85_v25 = vmul.f32 1.442695, %v82_v23 }
 0x10c   :  { %218 = vpow2.f32 %v83_v24 }
 0x10d   :  { %220 = vpow2.f32 %v85_v25 }
 0x112   :  { %v219_v26 = vpop.eup %218 }
 0x113   :  { %v221_v27 = vpop.eup %220  ;;  %90 = vperm.xlu1 %215, %v219_v26  }
 0x114   :  { %93 = vperm.xlu2 %216, %v221_v27  }
 0x16e   :  { %v94_v28 = vpop.permute.xlu2 %93 }
 0x16f   :  { %v96_v30 = vperm.slane %v94_v28, %v371_v12 }
 0x185   :  { %v91_v29 = vpop.permute.xlu1 %90 }
 0x186   :  { %v95_v31 = vperm.slane %v91_v29, %v371_v12 }
 0x188   :  { %v97_v32 = vsel %vm69_vm1, %v96_v30, %v95_v31 }
 0x189   :  { %v99_v33 = vsel %vm72_vm2, %v97_v32, 0.0 }
 0x18a   :  { %100 = vadd.xlane.f32.xlu2 %v99_v33 }
 0x1fd   :  { %v101_v34 = vpop.xlane.xlu2 %100 }
 0x1fe   :  { %v103_v35 = vperm.slane %v101_v34, 0  ;;  %v104_v36 = vperm.slane %v101_v34, 1 }
 0x200   :  { %222 = vrcp.f32 %v103_v35  ;;  %v118_v43 = vand.u32 2147483648, %v103_v35  ;;  %v133_v44 = vand.u32 2147483648, %v104_v36  ;;  %v116_v46 = vand.u32 2147483647, %v103_v35 }
 0x201   :  { %224 = vrcp.f32 %v104_v36  ;;  %v131_v48 = vand.u32 2147483647, %v104_v36  ;;  %vm112_vm5 = vweird.f32 %v103_v35  ;;  %vm127_vm6 = vweird.f32 %v104_v36 }
 0x202   :  { %v119_v51 = vor.u32 1.1754944e-38, %v118_v43  ;;  %v134_v52 = vor.u32 1.1754944e-38, %v133_v44  ;;  %vm117_vm9 = vcmp.eq.f32.partialorder %v116_v46, 8.507059e+37 }
 0x203   :  { %vm132_vm10 = vcmp.eq.f32.partialorder %v131_v48, 8.507059e+37 }
 0x206   :  { %v223_v37 = vpop.eup %222 }
 0x207   :  { %v225_v38 = vpop.eup %224  ;;  %v108_v39 = vmul.f32 %v223_v37, %v103_v35  ;;  %vm113_vm3 = vweird.f32 %v223_v37 }
 0x208   :  { %v123_v40 = vmul.f32 %v225_v38, %v104_v36  ;;  %vm128_vm4 = vweird.f32 %v225_v38  ;;  %vm114_vm7 = vmor %vm112_vm5, %vm113_vm3 }
 0x209   :  { %v109_v41 = vsub.f32 1.0, %v108_v39  ;;  %vm129_vm8 = vmor %vm127_vm6, %vm128_vm4 }
 0x20a   :  { %v124_v42 = vsub.f32 1.0, %v123_v40 }
 0x20b   :  { %v110_v45 = vmul.f32 %v223_v37, %v109_v41 }
 0x20c   :  { %v125_v47 = vmul.f32 %v225_v38, %v124_v42 }
 0x20d   :  { %v111_v49 = vadd.f32 %v223_v37, %v110_v45 }
 0x20e   :  { %v126_v50 = vadd.f32 %v225_v38, %v125_v47 }
 0x20f   :  { %v115_v53 = vsel %vm114_vm7, %v223_v37, %v111_v49 }
 0x210   :  { %v130_v54 = vsel %vm129_vm8, %v225_v38, %v126_v50  ;;  %v120_v55 = vsel %vm117_vm9, %v119_v51, %v115_v53 }
 0x211   :  { %v135_v56 = vsel %vm132_vm10, %v134_v52, %v130_v54  ;;  %v121_v57 = vmul.f32 %v219_v26, %v120_v55 }
 0x212   :  { %v136_v58 = vmul.f32 %v221_v27, %v135_v56 }
 0x213   :  { %139 = vperm.xlu0 %217, %v121_v57  }
 0x214   :  { %144 = vperm.xlu1 %215, %v136_v58  }
 0x285   :  { %v140_v59 = vpop.permute.xlu0 %139 }
 0x286   :  { %v145_v60 = vpop.permute.xlu1 %144  ;;  %v147_v61 = vmul.f32 %v140_v59, %v363_v1  ;;  %v163_v62 = vperm.slane %v140_v59, %v371_v12 }
 0x287   :  { %v148_v63 = vmul.f32 %v145_v60, %v366_v6  ;;  %v164_v0 = vperm.slane %v145_v60, %v371_v12 }
 0x288   :  { %v149_v2 = vsel %vm56_vm0, %v147_v61, 0.0 }
 0x289   :  { %v156_v3 = vsel %vm56_vm0, %v148_v63, 0.0  ;;  %v150_v4 = vrot.slane %v149_v2, 4  ;;  %v165_v5 = vsel %vm69_vm1, %v164_v0, %v163_v62 }
 0x28a   :  { %v157_v7 = vrot.slane %v156_v3, 4  ;;  %167 = vst.msk [vmem:[#allocation7] sm:$0x3] %vm72_vm2, %v165_v5 }
 0x28b   :  { %v151_v8 = vadd.f32 %v150_v4, %v149_v2  ;;  %184 = dma.vmem_to_hbm [thread:$0]  %s180_s1, 32, %s182_s26, [#allocation4]  }
 0x28c   :  { %v158_v1 = vadd.f32 %v157_v7, %v156_v3 }
 0x28d   :  { %v152_v9 = vrot.slane %v151_v8, 2 }
 0x28e   :  { %v159_v10 = vrot.slane %v158_v1, 2 }
 0x28f   :  { %v153_v6 = vadd.f32 %v152_v9, %v151_v8 }
 0x290   :  { %v160_v11 = vadd.f32 %v159_v10, %v158_v1 }
 0x291   :  { %v154_v12 = vrot.slane %v153_v6, 1 }
 0x292   :  { %v161_v13 = vrot.slane %v160_v11, 1 }
 0x293   :  { %v155_v14 = vadd.f32 %v154_v12, %v153_v6 }
 0x294   :  { %v162_v15 = vadd.f32 %v161_v13, %v160_v11 }
 0x296   :  { %v170_v16 = vsel %vm69_vm1, %v162_v15, %v155_v14 }
 0x297   :  { %173 = vst.msk [vmem:[#allocation8] sm:$0x3] %vm172_vm11, %v170_v16 }
 0x298   :  { %195 = dma.vmem_to_hbm [thread:$0]  %s191_s27, 32, %s193_s30, [#allocation9]  }
 0x299   :  { %326 = dma.done.wait [#allocation4], 32  }
 0x29a   :  { %327 = vsyncadd [#allocation4], 4294967264 }
 0x29b   :  { %328 = dma.done.wait [#allocation9], 32  }
 0x29c   :  { %329 = vsyncadd [#allocation9], 4294967264 }
 0x29d   :  { %204 = vsyncpa [#allocation3], 1 }
 0x29e   :  { %205 = vsyncpa [#allocation6], 1 }
 0x29f   :  { %206 = vsyncpa [#allocation4], 1 }
 0x2a0   :  { %207 = vsyncpa [#allocation9], 1 }

</bundles_post_ra>
